<compile_context>
chip_gen: v5e
topology: v5e:2x2
jax: 0.10.0
libtpu: 0.0.40
codegen_flags: <defaults>
</compile_context>

<pallas_src>
import functools

import jax
import jax.numpy as jnp
from jax.experimental import pallas as pl
from jax.experimental.pallas import tpu as pltpu

BN_EPS = 1e-5
H1, H2, H3 = 128, 64, 32   # hidden widths from the PyTorch module
LANES = 128                # every packed weight segment is padded to 128 lanes


def _round_up(x, m):
    return (x + m - 1) // m * m


def _mlp_kernel(x_ref, w_ref, b_ref, o_ref, *, d_in_pad, out_dim):
    """Whole 4-layer MLP on one batch tile.

    w_ref is one packed (d_in_pad + 3*128, 128) slab:
        rows [0, d_in_pad)        : fc1 weight (zero-padded extra rows)
        rows [d_in_pad, +128)     : fc2 weight with BN folded (cols 64.. zero)
        rows [.., +128)           : fc3 weight (rows 64.. / cols 32.. zero)
        rows [.., +128)           : fc4 weight (rows 32.. / cols out_dim.. zero)
    b_ref is a (4, 128) bias slab (row i = layer i+1 bias, zero-padded).
    Zero-padded columns stay exactly zero through bias-add + relu, and the zero
    rows of the next weight segment ignore them, so padding never leaks into
    the first `out_dim` output columns.
    """
    wdt = w_ref.dtype
    r1 = d_in_pad
    r2 = r1 + LANES
    r3 = r2 + LANES
    r4 = r3 + LANES

    # fc1 -> relu   (eval-mode BN folded into fc2 by the wrapper; dropout = identity)
    h = jnp.dot(x_ref[...].astype(wdt), w_ref[0:r1, :],
                preferred_element_type=jnp.float32) + b_ref[0:1, :]
    h = jnp.maximum(h, 0.0)

    # fc2 (BN folded) -> relu
    h = jnp.dot(h.astype(wdt), w_ref[r1:r2, :],
                preferred_element_type=jnp.float32) + b_ref[1:2, :]
    h = jnp.maximum(h, 0.0)

    # fc3 -> relu
    h = jnp.dot(h.astype(wdt), w_ref[r2:r3, :],
                preferred_element_type=jnp.float32) + b_ref[2:3, :]
    h = jnp.maximum(h, 0.0)

    # fc4
    h = jnp.dot(h.astype(wdt), w_ref[r3:r4, :],
                preferred_element_type=jnp.float32) + b_ref[3:4, :]

    # Narrow (out_dim-wide) store: tiny HBM writeback instead of a padded
    # 128-wide f32 slab.
    o_ref[...] = h[:, :out_dim].astype(o_ref.dtype)


def prepare_params(params, *, weight_dtype=jnp.float32):
    """One-time, load-time parameter prep (hoisted out of the per-call path).

    Folds eval-mode BatchNorm into fc2, zero-pads every layer to 128 lanes,
    packs all weights into a single (K_total, 128) slab and all biases into a
    (4, 128) slab, and casts the MXU operands to `weight_dtype`.
    Returns (w_slab, b_slab, d_in_pad, out_dim).
    """
    (w1, b1, g1, beta1, mean1, var1, w2, b2, w3, b3, w4, b4) = params
    d_in = w1.shape[0]
    out_dim = w4.shape[1]
    d_in_pad = _round_up(d_in, 16)   # sublane-aligned for both f32 and bf16

    # Fold inference-mode BN (applied to relu(fc1(x))) into fc2: exact rewrite.
    s = g1 * jax.lax.rsqrt(var1 + BN_EPS)      # (1, 128)
    t = beta1 - mean1 * s                      # (1, 128)
    w2f = s.reshape(-1, 1) * w2                # (128, 64)
    b2f = b2 + t @ w2                          # (1, 64)

    def pad_block(a, rows, cols=LANES):
        out = jnp.zeros((rows, cols), jnp.float32)
        return out.at[: a.shape[0], : a.shape[1]].set(a.astype(jnp.float32))

    w_slab = jnp.concatenate([
        pad_block(w1, d_in_pad),
        pad_block(w2f, LANES),
        pad_block(w3, LANES),
        pad_block(w4, LANES),
    ], axis=0).astype(weight_dtype)

    # Biases stay f32 (bias-add / relu run in f32; v5e has no bf16 VPU).
    b_slab = jnp.concatenate([
        pad_block(b1, 1),
        pad_block(b2f, 1),
        pad_block(b3, 1),
        pad_block(b4, 1),
    ], axis=0)                                   # (4, 128) float32

    return w_slab, b_slab, d_in_pad, out_dim


def net_forward(x, w_slab, b_slab, d_in_pad, out_dim, *, batch_tile=None):
    """Per-call path: exactly one pallas_call (3 input DMAs, 1 output DMA)."""
    B, d_in = x.shape
    assert w_slab.shape == (d_in_pad + 3 * LANES, LANES), w_slab.shape

    if d_in != d_in_pad:
        # Zero-pad x columns to match the padded fc1 rows (no-op when aligned).
        x = jnp.pad(x, ((0, 0), (0, d_in_pad - d_in)))

    # One grid step for small batches (no per-step pipeline overhead); 512-row
    # tiles for large batches so there are >=2 parallel steps (v7x megacore).
    if batch_tile is None:
        batch_tile = B if B <= 512 else 512
    assert B % batch_tile == 0, (B, batch_tile)  # TODO(synk): pad/mask ragged batches
    grid = (B // batch_tile,)

    flops = 2 * B * (d_in * H1 + H1 * H2 + H2 * H3 + H3 * out_dim)
    bytes_accessed = (x.size * x.dtype.itemsize
                      + w_slab.size * w_slab.dtype.itemsize
                      + b_slab.size * b_slab.dtype.itemsize
                      + B * out_dim * 4)

    kernel = functools.partial(_mlp_kernel, d_in_pad=d_in_pad, out_dim=out_dim)

    return pl.pallas_call(
        kernel,
        out_shape=jax.ShapeDtypeStruct((B, out_dim), jnp.float32),
        grid=grid,
        in_specs=[
            pl.BlockSpec((batch_tile, d_in_pad), lambda i: (i, 0)),
            pl.BlockSpec(w_slab.shape, lambda i: (0, 0)),   # constant block index
            pl.BlockSpec(b_slab.shape, lambda i: (0, 0)),
        ],
        out_specs=pl.BlockSpec((batch_tile, out_dim), lambda i: (i, 0)),
        compiler_params=pltpu.CompilerParams(
            dimension_semantics=("parallel",)),
        cost_estimate=pl.CostEstimate(
            flops=flops, transcendentals=0, bytes_accessed=bytes_accessed),
    )(x, w_slab, b_slab)


def init_params(key, input_size):
    """Parameters matching the PyTorch module's shapes.

    Linear weights stored transposed: (in_features, out_features); biases and
    BN params as (1, features) rows.  BN params are randomized to exercise the
    eval-mode fold (PyTorch init would be weight=1, bias=0, mean=0, var=1).
    """
    dims = [(input_size, H1), (H1, H2), (H2, H3), (H3, 1)]
    keys = jax.random.split(key, 12)
    w1 = jax.random.normal(keys[0], dims[0], jnp.float32) * 0.05
    b1 = jax.random.normal(keys[1], (1, H1), jnp.float32) * 0.05
    g1 = 1.0 + 0.1 * jax.random.normal(keys[2], (1, H1), jnp.float32)
    beta1 = 0.1 * jax.random.normal(keys[3], (1, H1), jnp.float32)
    mean1 = 0.1 * jax.random.normal(keys[4], (1, H1), jnp.float32)
    var1 = jax.random.uniform(keys[5], (1, H1), jnp.float32, minval=0.5, maxval=1.5)
    params = [w1, b1, g1, beta1, mean1, var1]
    for idx, (din, dout) in enumerate(dims[1:], start=1):
        w = jax.random.normal(keys[4 + 2 * idx], (din, dout), jnp.float32) * 0.05
        b = jax.random.normal(keys[5 + 2 * idx], (1, dout), jnp.float32) * 0.05
        params += [w, b]
    return tuple(params)


def net_forward_ref(x, params):
    """Pure-JAX reference (PyTorch eval-mode forward order)."""
    (w1, b1, g1, beta1, mean1, var1, w2, b2, w3, b3, w4, b4) = params
    h = jnp.maximum(x @ w1 + b1, 0.0)
    h = (h - mean1) / jnp.sqrt(var1 + BN_EPS) * g1 + beta1
    h = jnp.maximum(h @ w2 + b2, 0.0)
    h = jnp.maximum(h @ w3 + b3, 0.0)
    return h @ w4 + b4


if __name__ == "__main__":
    key = jax.random.PRNGKey(0)
    k_x, k_p = jax.random.split(key)

    batch, input_size = 16, 32
    x = jax.random.normal(k_x, (batch, input_size), jnp.float32)
    params = init_params(k_p, input_size)

    # Load-time prep (BN fold + packing + padding + cast), done once.
    w_slab, b_slab, d_in_pad, out_dim = prepare_params(params)
    w_slab, b_slab = jax.block_until_ready((w_slab, b_slab))

    fwd = jax.jit(functools.partial(net_forward, d_in_pad=d_in_pad, out_dim=out_dim))
    out = jax.block_until_ready(fwd(x, w_slab, b_slab))   # grid=1 for B=16

    ref = net_forward_ref(x, params)
    assert out.shape == (batch, 1), out.shape
    max_err = float(jnp.max(jnp.abs(out - ref)))
    assert jnp.allclose(out, ref, atol=1e-4, rtol=1e-4), max_err

    print("KERNEL_OK")
</pallas_src>

<mosaic_0001>
module attributes {stable_mosaic.version = 11 : i64} {
  func.func @_mlp_kernel(%arg0: i32, %arg1: memref<16x32xf32, #tpu.memory_space<vmem>>, %arg2: memref<416x128xf32, #tpu.memory_space<vmem>>, %arg3: memref<4x128xf32, #tpu.memory_space<vmem>>, %arg4: memref<16x1xf32, #tpu.memory_space<vmem>>) attributes {dimension_semantics = [#tpu.dimension_semantics<parallel>], iteration_bounds = array<i64: 1>, scalar_prefetch = 0 : i64, scratch_operands = 0 : i64, tpu.core_type = #tpu.core_type<tc>, window_params = [{transform_indices = @transform_0, window_bounds = array<i64: 16, 32>}, {pipeline_mode = #tpu.pipeline_mode<synchronous>, transform_indices = @transform_1, window_bounds = array<i64: 416, 128>}, {pipeline_mode = #tpu.pipeline_mode<synchronous>, transform_indices = @transform_2, window_bounds = array<i64: 4, 128>}, {transform_indices = @transform_3, window_bounds = array<i64: 16, 1>}]} {
    %c0 = arith.constant 0 : index
    %c0_0 = arith.constant 0 : index
    %0 = vector.load %arg1[%c0, %c0_0] : memref<16x32xf32, #tpu.memory_space<vmem>>, vector<16x32xf32>
    %c0_1 = arith.constant 0 : index
    %c0_2 = arith.constant 0 : index
    %1 = vector.load %arg2[%c0_1, %c0_2] : memref<416x128xf32, #tpu.memory_space<vmem>>, vector<32x128xf32>
    %cst = arith.constant dense<0.000000e+00> : vector<16x128xf32>
    %2 = tpu.matmul %0, %1, %cst {dimension_numbers = #tpu.dot_dimension_numbers<[1], [0], [0], [1], [0, 0, 1, 1], [], []>} : vector<16x32xf32>, vector<32x128xf32>, vector<16x128xf32> -> vector<16x128xf32>
    %c0_3 = arith.constant 0 : index
    %c0_4 = arith.constant 0 : index
    %3 = vector.load %arg3[%c0_3, %c0_4] : memref<4x128xf32, #tpu.memory_space<vmem>>, vector<1x128xf32>
    %4 = vector.broadcast %3 : vector<1x128xf32> to vector<16x128xf32>
    %5 = arith.addf %2, %4 : vector<16x128xf32>
    %cst_5 = arith.constant 0.000000e+00 : f32
    %6 = vector.broadcast %cst_5 : f32 to vector<16x128xf32>
    %7 = arith.maximumf %5, %6 : vector<16x128xf32>
    %c32 = arith.constant 32 : index
    %c0_6 = arith.constant 0 : index
    %8 = vector.load %arg2[%c32, %c0_6] : memref<416x128xf32, #tpu.memory_space<vmem>>, vector<128x128xf32>
    %cst_7 = arith.constant dense<0.000000e+00> : vector<16x128xf32>
    %9 = tpu.matmul %7, %8, %cst_7 {dimension_numbers = #tpu.dot_dimension_numbers<[1], [0], [0], [1], [0, 0, 1, 1], [], []>} : vector<16x128xf32>, vector<128x128xf32>, vector<16x128xf32> -> vector<16x128xf32>
    %c1 = arith.constant 1 : index
    %c0_8 = arith.constant 0 : index
    %10 = vector.load %arg3[%c1, %c0_8] : memref<4x128xf32, #tpu.memory_space<vmem>>, vector<1x128xf32>
    %11 = vector.broadcast %10 : vector<1x128xf32> to vector<16x128xf32>
    %12 = arith.addf %9, %11 : vector<16x128xf32>
    %cst_9 = arith.constant 0.000000e+00 : f32
    %13 = vector.broadcast %cst_9 : f32 to vector<16x128xf32>
    %14 = arith.maximumf %12, %13 : vector<16x128xf32>
    %c160 = arith.constant 160 : index
    %c0_10 = arith.constant 0 : index
    %15 = vector.load %arg2[%c160, %c0_10] : memref<416x128xf32, #tpu.memory_space<vmem>>, vector<128x128xf32>
    %cst_11 = arith.constant dense<0.000000e+00> : vector<16x128xf32>
    %16 = tpu.matmul %14, %15, %cst_11 {dimension_numbers = #tpu.dot_dimension_numbers<[1], [0], [0], [1], [0, 0, 1, 1], [], []>} : vector<16x128xf32>, vector<128x128xf32>, vector<16x128xf32> -> vector<16x128xf32>
    %c2 = arith.constant 2 : index
    %c0_12 = arith.constant 0 : index
    %17 = vector.load %arg3[%c2, %c0_12] : memref<4x128xf32, #tpu.memory_space<vmem>>, vector<1x128xf32>
    %18 = vector.broadcast %17 : vector<1x128xf32> to vector<16x128xf32>
    %19 = arith.addf %16, %18 : vector<16x128xf32>
    %cst_13 = arith.constant 0.000000e+00 : f32
    %20 = vector.broadcast %cst_13 : f32 to vector<16x128xf32>
    %21 = arith.maximumf %19, %20 : vector<16x128xf32>
    %c288 = arith.constant 288 : index
    %c0_14 = arith.constant 0 : index
    %22 = vector.load %arg2[%c288, %c0_14] : memref<416x128xf32, #tpu.memory_space<vmem>>, vector<128x128xf32>
    %cst_15 = arith.constant dense<0.000000e+00> : vector<16x128xf32>
    %23 = tpu.matmul %21, %22, %cst_15 {dimension_numbers = #tpu.dot_dimension_numbers<[1], [0], [0], [1], [0, 0, 1, 1], [], []>} : vector<16x128xf32>, vector<128x128xf32>, vector<16x128xf32> -> vector<16x128xf32>
    %c3 = arith.constant 3 : index
    %c0_16 = arith.constant 0 : index
    %24 = vector.load %arg3[%c3, %c0_16] : memref<4x128xf32, #tpu.memory_space<vmem>>, vector<1x128xf32>
    %25 = vector.broadcast %24 : vector<1x128xf32> to vector<16x128xf32>
    %26 = arith.addf %23, %25 : vector<16x128xf32>
    %27 = vector.extract_strided_slice %26 {offsets = [0, 0], sizes = [16, 1], strides = [1, 1]} : vector<16x128xf32> to vector<16x1xf32>
    %c0_17 = arith.constant 0 : index
    %c0_18 = arith.constant 0 : index
    %28 = vector.load %arg4[%c0_17, %c0_18] : memref<16x1xf32, #tpu.memory_space<vmem>>, vector<16x1xf32>
    tpu.vector_store %arg4[%c0_17, %c0_18], %27 {strides = array<i32>} : memref<16x1xf32, #tpu.memory_space<vmem>>, vector<16x1xf32>,
    return
  }
  func.func @transform_0(%arg0: i32) -> (i32, i32) {
    %c0_i32 = arith.constant 0 : i32
    %c0_i32_0 = arith.constant 0 : i32
    return %arg0, %c0_i32 : i32, i32
  }
  func.func @transform_1(%arg0: i32) -> (i32, i32) {
    %c0_i32 = arith.constant 0 : i32
    %c0_i32_0 = arith.constant 0 : i32
    %c0_i32_1 = arith.constant 0 : i32
    return %c0_i32, %c0_i32_0 : i32, i32
  }
  func.func @transform_2(%arg0: i32) -> (i32, i32) {
    %c0_i32 = arith.constant 0 : i32
    %c0_i32_0 = arith.constant 0 : i32
    %c0_i32_1 = arith.constant 0 : i32
    return %c0_i32, %c0_i32_0 : i32, i32
  }
  func.func @transform_3(%arg0: i32) -> (i32, i32) {
    %c0_i32 = arith.constant 0 : i32
    %c0_i32_0 = arith.constant 0 : i32
    return %arg0, %c0_i32 : i32, i32
  }
}

</mosaic_0001>

<bundles_post_ra>
// kernel: net_forward.1
= control target key start
LH: loop header
LB: loop body
LE: loop exit
PB: predicated region body
PF: predicated region fallthrough
CT: control target
= control target key end

     0   :  { %8 = vsyncpa [#allocation3], 0  ;;  %s362_s0 = inlined_call_operand.hbm [shape: f32[16,32], index: 0, kind: input, shape index: {}]   ;;  %s363_s1 = inlined_call_operand.hbm [shape: f32[416,128], index: 1, kind: input, shape index: {}]   ;;  %s364_s2 = inlined_call_operand.hbm [shape: f32[4,128], index: 2, kind: input, shape index: {}]   ;;  %s365_s3 = inlined_call_operand.vmem [shape: f32[16,1], index: 3, kind: output, shape index: {}]  }
   0x1   :  { %9 = vsyncpa [#allocation5], 0  ;;  %s27_s14 = sshll.u32 %s363_s1, 4  ;;  %s322_s15 = smov [#allocation4]   ;;  %s28_s14 = int_to_ptr.hbm [resolvable:$true] %s27_s14 }
   0x2   :  { %s29_s16 = sshll.u32 %s322_s15, 4  ;;  %s14_s19 = sshll.u32 %s362_s0, 4  ;;  %s30_s16 = int_to_ptr.vmem [resolvable:$true] %s29_s16  ;;  %s15_s19 = int_to_ptr.hbm [resolvable:$true] %s14_s19 }
   0x3   :  { %s323_s20 = smov 128   ;;  %s324_s21 = smov 8  }
   0x4   :  { %35 = dma.hbm_to_vmem [thread:$0]  %s28_s14, 6656, %s30_s16, [#allocation5], %s323_s20, %s323_s20, %s324_s21  }
   0x5   :  { %s325_s22 = smov [#allocation2]   ;;  %s41_s26 = sshll.u32 %s364_s2, 4  ;;  %s42_s26 = int_to_ptr.hbm [resolvable:$true] %s41_s26 }
   0x6   :  { %s16_s23 = sshll.u32 %s325_s22, 4  ;;  %s326_s1 = smov [#allocation6]   ;;  %s17_s23 = int_to_ptr.vmem [resolvable:$true] %s16_s23 }
   0x7   :  { %22 = dma.hbm_to_vmem [thread:$0]  %s15_s19, 256, %s17_s23, [#allocation3], %s323_s20, %s323_s20, %s324_s21  }
   0x8   :  { %s43_s27 = sshll.u32 %s326_s1, 4  ;;  %s44_s27 = int_to_ptr.vmem [resolvable:$true] %s43_s27 }
   0x9   :  { %46 = dma.hbm_to_vmem [thread:$0]  %s42_s26, 64, %s44_s27, [#allocation5]  }
   0xa   :  { %318 = dma.done.wait [#allocation3], 256  }
   0xb   :  { %319 = vsyncadd [#allocation3], 4294967040 }
   0xc   :  { %320 = dma.done.wait [#allocation5], 6720  }
   0xd   :  { %321 = vsyncadd [#allocation5], 4294960576  ;;  %v64_v0 = vld [vmem:[#allocation4 + $0x18] sm:$0xff]  ;;  %v63_v1 = vld [vmem:[#allocation4 + $0x10] sm:$0xff]  ;;  %vm67_vm0 = vcmask 261120   ;;  %vm226_vm1 = vcmask 7168  }
   0xe   :  { %86 = vmatpush.msra.mxu0 %v64_v0  ;;  %v62_v2 = vld [vmem:[#allocation4 + $0x8] sm:$0xff]  ;;  %v114_v3 = vld [vmem:[#allocation4 + $0x98] sm:$0xff]  ;;  %v113_v4 = vld [vmem:[#allocation4 + $0x90] sm:$0xff] }
   0xf   :  { %117 = vmatpush.msra.mxu1 %v114_v3  ;;  %v61_v5 = vld [vmem:[#allocation4] sm:$0xff]  ;;  %v112_v6 = vld [vmem:[#allocation4 + $0x88] sm:$0xff]  ;;  %v59_v7 = vld [vmem:[#allocation2] sm:$0xff] }
  0x10   :  { %87 = vmatpush.msra.mxu0 %v63_v1  ;;  %v111_v8 = vld [vmem:[#allocation4 + $0x80] sm:$0xff]  ;;  %v110_v9 = vld [vmem:[#allocation4 + $0x78] sm:$0xff]  ;;  %v109_v10 = vld [vmem:[#allocation4 + $0x70] sm:$0xff] }
  0x11   :  { %118 = vmatpush.msra.mxu1 %v113_v4  ;;  %v108_v11 = vld [vmem:[#allocation4 + $0x68] sm:$0xff]  ;;  %v60_v12 = vld [vmem:[#allocation2 + $0x8] sm:$0xff]  ;;  %v107_v13 = vld [vmem:[#allocation4 + $0x60] sm:$0xff] }
  0x12   :  { %88 = vmatpush.msra.mxu0 %v62_v2  ;;  %v106_v14 = vld [vmem:[#allocation4 + $0x58] sm:$0xff]  ;;  %v105_v15 = vld [vmem:[#allocation4 + $0x50] sm:$0xff]  ;;  %v104_v16 = vld [vmem:[#allocation4 + $0x48] sm:$0xff] }
  0x13   :  { %119 = vmatpush.msra.mxu1 %v112_v6  ;;  %v103_v17 = vld [vmem:[#allocation4 + $0x40] sm:$0xff]  ;;  %v102_v18 = vld [vmem:[#allocation4 + $0x38] sm:$0xff]  ;;  %v101_v19 = vld [vmem:[#allocation4 + $0x30] sm:$0xff] }
  0x14   :  { %89 = vmatpush.msra.mxu0 %v61_v5  ;;  %v100_v20 = vld [vmem:[#allocation4 + $0x28] sm:$0xff]  ;;  %v99_v21 = vld [vmem:[#allocation4 + $0x20] sm:$0xff]  ;;  %v157_v22 = vld [vmem:[#allocation4 + $0x118] sm:$0xff] }
  0x15   :  { %235 = vmatmul.msk.f32.vlgmr.msra.gmra.mxu0 %vm67_vm0, %v59_v7  ;;  %120 = vmatpush.msra.mxu1 %v111_v8  ;;  %v156_v23 = vld [vmem:[#allocation4 + $0x110] sm:$0xff]  ;;  %v155_v24 = vld [vmem:[#allocation4 + $0x108] sm:$0xff]  ;;  %v154_v25 = vld [vmem:[#allocation4 + $0x100] sm:$0xff] }
  0x16   :  { %160 = vmatpush.msra.mxu2 %v157_v22  ;;  %v153_v26 = vld [vmem:[#allocation4 + $0xf8] sm:$0xff]  ;;  %v152_v27 = vld [vmem:[#allocation4 + $0xf0] sm:$0xff]  ;;  %v151_v28 = vld [vmem:[#allocation4 + $0xe8] sm:$0xff] }
  0x17   :  { %121 = vmatpush.msra.mxu1 %v110_v9  ;;  %v150_v29 = vld [vmem:[#allocation4 + $0xe0] sm:$0xff]  ;;  %v149_v30 = vld [vmem:[#allocation4 + $0xd8] sm:$0xff]  ;;  %v148_v32 = vld [vmem:[#allocation4 + $0xd0] sm:$0xff] }
  0x18   :  { %161 = vmatpush.msra.mxu2 %v156_v23  ;;  %v242_v31 = vld [vmem:[#allocation6] ss:$0 sm:$0xff]  ;;  %v147_v33 = vld [vmem:[#allocation4 + $0xc8] sm:$0xff]  ;;  %v145_v38 = vld [vmem:[#allocation4 + $0xb8] sm:$0xff] }
  0x19   :  { %122 = vmatpush.msra.mxu1 %v109_v10  ;;  %v146_v36 = vld [vmem:[#allocation4 + $0xc0] sm:$0xff]  ;;  %v144_v42 = vld [vmem:[#allocation4 + $0xb0] sm:$0xff]  ;;  %v143_v43 = vld [vmem:[#allocation4 + $0xa8] sm:$0xff] }
  0x1a   :  { %162 = vmatpush.msra.mxu2 %v155_v24  ;;  %v142_v44 = vld [vmem:[#allocation4 + $0xa0] sm:$0xff]  ;;  %v200_v45 = vld [vmem:[#allocation4 + $0x198] sm:$0xff]  ;;  %v199_v46 = vld [vmem:[#allocation4 + $0x190] sm:$0xff] }
  0x1b   :  { %123 = vmatpush.msra.mxu1 %v108_v11  ;;  %203 = vmatpush.msra.mxu3 %v200_v45  ;;  %v198_v47 = vld [vmem:[#allocation4 + $0x188] sm:$0xff]  ;;  %v197_v48 = vld [vmem:[#allocation4 + $0x180] sm:$0xff]  ;;  %v196_v49 = vld [vmem:[#allocation4 + $0x178] sm:$0xff] }
  0x1c   :  { %163 = vmatpush.msra.mxu2 %v154_v25  ;;  %v195_v50 = vld [vmem:[#allocation4 + $0x170] sm:$0xff]  ;;  %v194_v51 = vld [vmem:[#allocation4 + $0x168] sm:$0xff]  ;;  %v193_v52 = vld [vmem:[#allocation4 + $0x160] sm:$0xff] }
  0x1d   :  { %236 = vmatmul.msk.f32.gmra.mxu0 %vm67_vm0, %v60_v12  ;;  %124 = vmatpush.msra.mxu1 %v107_v13  ;;  %v192_v53 = vld [vmem:[#allocation4 + $0x158] sm:$0xff]  ;;  %v243_v54 = vld [vmem:[#allocation6 + $0x1] ss:$0 sm:$0xff]  ;;  %v191_v55 = vld [vmem:[#allocation4 + $0x150] sm:$0xff] }
  0x1e   :  { %164 = vmatpush.msra.mxu2 %v153_v26  ;;  %204 = vmatpush.msra.mxu3 %v199_v46  ;;  %v190_v56 = vld [vmem:[#allocation4 + $0x148] sm:$0xff]  ;;  %v189_v59 = vld [vmem:[#allocation4 + $0x140] sm:$0xff]  ;;  %v188_v61 = vld [vmem:[#allocation4 + $0x138] sm:$0xff] }
  0x1f   :  { %125 = vmatpush.msra.mxu1 %v106_v14  ;;  %v187_v1 = vld [vmem:[#allocation4 + $0x130] sm:$0xff]  ;;  %v186_v2 = vld [vmem:[#allocation4 + $0x128] sm:$0xff]  ;;  %v185_v3 = vld [vmem:[#allocation4 + $0x120] sm:$0xff] }
  0x20   :  { %165 = vmatpush.msra.mxu2 %v152_v27  ;;  %205 = vmatpush.msra.mxu3 %v198_v47  ;;  %v244_v4 = vld [vmem:[#allocation6 + $0x2] ss:$0 sm:$0xff]  ;;  %v245_v11 = vld [vmem:[#allocation6 + $0x3] ss:$0 sm:$0xff] }
  0x21   :  { %126 = vmatpush.msra.mxu1 %v105_v15 }
  0x22   :  { %166 = vmatpush.msra.mxu2 %v151_v28  ;;  %206 = vmatpush.msra.mxu3 %v197_v48 }
  0x23   :  { %127 = vmatpush.msra.mxu1 %v104_v16 }
  0x24   :  { %167 = vmatpush.msra.mxu2 %v150_v29  ;;  %207 = vmatpush.msra.mxu3 %v196_v49 }
  0x25   :  { %128 = vmatpush.msra.mxu1 %v103_v17 }
  0x26   :  { %168 = vmatpush.msra.mxu2 %v149_v30  ;;  %208 = vmatpush.msra.mxu3 %v195_v50 }
  0x27   :  { %129 = vmatpush.msra.mxu1 %v102_v18 }
  0x28   :  { %169 = vmatpush.msra.mxu2 %v148_v32  ;;  %209 = vmatpush.msra.mxu3 %v194_v51 }
  0x29   :  { %130 = vmatpush.msra.mxu1 %v101_v19 }
  0x2a   :  { %170 = vmatpush.msra.mxu2 %v147_v33  ;;  %210 = vmatpush.msra.mxu3 %v193_v52 }
  0x2b   :  { %131 = vmatpush.msra.mxu1 %v100_v20 }
  0x2c   :  { %171 = vmatpush.msra.mxu2 %v146_v36  ;;  %211 = vmatpush.msra.mxu3 %v192_v53 }
  0x2d   :  { %132 = vmatpush.msra.mxu1 %v99_v21 }
  0x2e   :  { %172 = vmatpush.msra.mxu2 %v145_v38  ;;  %212 = vmatpush.msra.mxu3 %v191_v55 }
  0x30   :  { %173 = vmatpush.msra.mxu2 %v144_v42  ;;  %213 = vmatpush.msra.mxu3 %v190_v56 }
  0x32   :  { %174 = vmatpush.msra.mxu2 %v143_v43  ;;  %214 = vmatpush.msra.mxu3 %v189_v59 }
  0x34   :  { %175 = vmatpush.msra.mxu2 %v142_v44  ;;  %215 = vmatpush.msra.mxu3 %v188_v61 }
  0x36   :  { %216 = vmatpush.msra.mxu3 %v187_v1 }
  0x38   :  { %217 = vmatpush.msra.mxu3 %v186_v2 }
  0x3a   :  { %218 = vmatpush.msra.mxu3 %v185_v3 }
  0x92   :  { %v91_v34 = vpop.f32.mrf.mxu0 }
  0x93   :  { %v92_v35 = vadd.f32 %v242_v31, %v91_v34 }
  0x95   :  { %v97_v37 = vmax.f32 %v92_v35, 0.0 }
  0x97   :  { %133 = vmatmul.f32.vlgmr.msra.gmra.mxu1 %v97_v37 }
  0x9a   :  { %v94_v39 = vpop.f32.mrf.mxu0 }
  0x9b   :  { %v95_v40 = vadd.f32 %v242_v31, %v94_v39 }
  0x9d   :  { %v98_v41 = vmax.f32 %v95_v40, 0.0 }
  0x9f   :  { %136 = vmatmul.f32.gmra.mxu1 %v98_v41 }
 0x114   :  { %v134_v57 = vpop.f32.mrf.mxu1 }
 0x115   :  { %v135_v58 = vadd.f32 %v243_v54, %v134_v57 }
 0x117   :  { %v140_v60 = vmax.f32 %v135_v58, 0.0 }
 0x119   :  { %176 = vmatmul.f32.vlgmr.msra.gmra.mxu2 %v140_v60 }
 0x11c   :  { %v137_v62 = vpop.f32.mrf.mxu1 }
 0x11d   :  { %v138_v63 = vadd.f32 %v243_v54, %v137_v62 }
 0x11f   :  { %v141_v0 = vmax.f32 %v138_v63, 0.0 }
 0x121   :  { %179 = vmatmul.f32.gmra.mxu2 %v141_v0 }
 0x19c   :  { %v177_v5 = vpop.f32.mrf.mxu2 }
 0x19d   :  { %v178_v6 = vadd.f32 %v244_v4, %v177_v5 }
 0x19f   :  { %v183_v7 = vmax.f32 %v178_v6, 0.0 }
 0x1a1   :  { %219 = vmatmul.f32.vlgmr.msra.gmra.mxu3 %v183_v7 }
 0x1a4   :  { %v180_v8 = vpop.f32.mrf.mxu2 }
 0x1a5   :  { %v181_v9 = vadd.f32 %v244_v4, %v180_v8 }
 0x1a7   :  { %v184_v10 = vmax.f32 %v181_v9, 0.0 }
 0x1a9   :  { %222 = vmatmul.f32.gmra.mxu3 %v184_v10 }
 0x224   :  { %v220_v12 = vpop.f32.mrf.mxu3 }
 0x225   :  { %v221_v13 = vadd.f32 %v245_v11, %v220_v12 }
 0x227   :  { %227 = vst.msk [vmem:[%s365_s3] sm:$0xff] %vm226_vm1, %v221_v13 }
 0x22c   :  { %v223_v14 = vpop.f32.mrf.mxu3 }
 0x22d   :  { %v224_v15 = vadd.f32 %v245_v11, %v223_v14 }
 0x22f   :  { %228 = vst.msk [vmem:[%s365_s3 + $0x8] sm:$0xff] %vm226_vm1, %v224_v15 }
 0x230   :  { %233 = vsyncpa [#allocation3], 1 }
 0x231   :  { %234 = vsyncpa [#allocation5], 1 }

</bundles_post_ra>
